<compile_context>
chip_gen: v7x
topology: tpu7x:2x2x1
jax: 0.10.0
libtpu: 0.0.40
codegen_flags: <defaults>
</compile_context>

<pallas_src>
import jax
import jax.numpy as jnp
import numpy as np
from jax.experimental import pallas as pl
from jax.experimental.pallas import tpu as pltpu


def sobel_kernel(x_ref, o_ref):
    # x_ref / o_ref blocks: (P, H, W) float32 planes (P whole channel-planes).
    x = x_ref[...].astype(jnp.float32)
    P, H, W = x.shape

    # Build the zero halo in VMEM (this is the padding=1 of the "same" conv).
    zrow = jnp.zeros((P, 1, W), jnp.float32)
    xp = jnp.concatenate([zrow, x, zrow], axis=1)          # (P, H+2, W)
    zcol = jnp.zeros((P, H + 2, 1), jnp.float32)
    xp = jnp.concatenate([zcol, xp, zcol], axis=2)          # (P, H+2, W+2)

    # Separable Sobel, cross-correlation form (matches F.conv2d):
    # sobel_x = [1,2,1]^T x [-1,0,1]  -> horizontal central diff, vertical [1,2,1]
    dh = xp[:, :, 2:] - xp[:, :, 0:W]                       # (P, H+2, W)
    gx = dh[:, 0:H, :] + 2.0 * dh[:, 1:H + 1, :] + dh[:, 2:H + 2, :]
    # sobel_y = [-1,0,1]^T x [1,2,1]  -> vertical central diff, horizontal [1,2,1]
    dv = xp[:, 2:, :] - xp[:, 0:H, :]                       # (P, H, W+2)
    gy = dv[:, :, 0:W] + 2.0 * dv[:, :, 1:W + 1] + dv[:, :, 2:W + 2]

    o_ref[...] = jnp.sqrt(gx * gx + gy * gy).astype(o_ref.dtype)


def sobel_filter(x, *, target_block_bytes=1 << 20):
    """Per-channel Sobel edge magnitude of x (B, C, H, W), same shape out."""
    B, C, H, W = x.shape
    x = x.astype(jnp.float32)           # no-op for f32 inputs (no extra HBM pass)
    N = B * C
    xr = x.reshape(N, H, W)             # free reshape (row-major contiguous)

    # Planes per grid step: biggest divisor of N with block <= ~1 MiB so the
    # pipeline runs near the HBM roofline without blowing the VMEM budget
    # (2 in-bufs + 2 out-bufs + compute temporaries).
    plane_bytes = H * W * 4
    p = max(1, min(N, target_block_bytes // plane_bytes))
    while N % p:
        p -= 1
    grid = (N // p,)

    spec = pl.BlockSpec((p, H, W), lambda i: (i, 0, 0))

    edges = pl.pallas_call(
        sobel_kernel,
        out_shape=jax.ShapeDtypeStruct((N, H, W), jnp.float32),
        grid=grid,
        in_specs=[spec],
        out_specs=spec,
        compiler_params=pltpu.CompilerParams(
            dimension_semantics=("parallel",),      # independent blocks -> v7x 2-TC split
            vmem_limit_bytes=32 * 1024 * 1024,
        ),
        cost_estimate=pl.CostEstimate(
            flops=14 * N * H * W,                   # stencil adds/muls
            transcendentals=N * H * W,              # one sqrt per element
            bytes_accessed=2 * N * H * W * 4,       # read x + write edges
        ),
    )(xr)
    return edges.reshape(B, C, H, W)


def _sobel_ref(x):
    """Pure-JAX reference mirroring the PyTorch SobelFilter.forward."""
    xp = jnp.pad(x, ((0, 0), (0, 0), (1, 1), (1, 1)))
    nw = xp[:, :, 0:-2, 0:-2]
    n_ = xp[:, :, 0:-2, 1:-1]
    ne = xp[:, :, 0:-2, 2:]
    w_ = xp[:, :, 1:-1, 0:-2]
    e_ = xp[:, :, 1:-1, 2:]
    sw = xp[:, :, 2:, 0:-2]
    s_ = xp[:, :, 2:, 1:-1]
    se = xp[:, :, 2:, 2:]
    gx = (ne - nw) + 2.0 * (e_ - w_) + (se - sw)
    gy = (sw - nw) + 2.0 * (s_ - n_) + (se - ne)
    return jnp.sqrt(gx * gx + gy * gy)


if __name__ == "__main__":
    key = jax.random.PRNGKey(0)
    B, C, H, W = 2, 4, 16, 16
    x = jax.random.normal(key, (B, C, H, W), dtype=jnp.float32)

    edges = jax.block_until_ready(sobel_filter(x))
    edges_ref = jax.block_until_ready(_sobel_ref(x))

    if not np.allclose(np.asarray(edges), np.asarray(edges_ref), rtol=1e-5, atol=1e-5):
        raise AssertionError(
            f"mismatch: max_abs_err="
            f"{np.max(np.abs(np.asarray(edges) - np.asarray(edges_ref)))}")
    print("KERNEL_OK")
</pallas_src>

<mosaic_0001>
module attributes {stable_mosaic.version = 11 : i64} {
  func.func @sobel_kernel(%arg0: i32, %arg1: memref<8x16x16xf32, #tpu.memory_space<vmem>>, %arg2: memref<8x16x16xf32, #tpu.memory_space<vmem>>) attributes {dimension_semantics = [#tpu.dimension_semantics<parallel>], iteration_bounds = array<i64: 1>, scalar_prefetch = 0 : i64, scratch_operands = 0 : i64, tpu.core_type = #tpu.core_type<tc>, window_params = [{transform_indices = @transform_0, window_bounds = array<i64: 8, 16, 16>}, {transform_indices = @transform_1, window_bounds = array<i64: 8, 16, 16>}]} {
    %c0 = arith.constant 0 : index
    %c0_0 = arith.constant 0 : index
    %c0_1 = arith.constant 0 : index
    %0 = vector.load %arg1[%c0, %c0_0, %c0_1] : memref<8x16x16xf32, #tpu.memory_space<vmem>>, vector<8x16x16xf32>
    %cst = arith.constant 0.000000e+00 : f32
    %1 = vector.broadcast %cst : f32 to vector<8x1x16xf32>
    %2 = tpu.concatenate %1, %0, %1 in 1 : vector<8x1x16xf32>, vector<8x16x16xf32>, vector<8x1x16xf32> -> vector<8x18x16xf32>
    %cst_2 = arith.constant 0.000000e+00 : f32
    %3 = vector.broadcast %cst_2 : f32 to vector<8x18x1xf32>
    %4 = tpu.concatenate %3, %2, %3 in 2 : vector<8x18x1xf32>, vector<8x18x16xf32>, vector<8x18x1xf32> -> vector<8x18x18xf32>
    %5 = vector.extract_strided_slice %4 {offsets = [0, 0, 2], sizes = [8, 18, 16], strides = [1, 1, 1]} : vector<8x18x18xf32> to vector<8x18x16xf32>
    %6 = vector.extract_strided_slice %4 {offsets = [0, 0, 0], sizes = [8, 18, 16], strides = [1, 1, 1]} : vector<8x18x18xf32> to vector<8x18x16xf32>
    %7 = arith.subf %5, %6 : vector<8x18x16xf32>
    %8 = vector.extract_strided_slice %7 {offsets = [0, 0, 0], sizes = [8, 16, 16], strides = [1, 1, 1]} : vector<8x18x16xf32> to vector<8x16x16xf32>
    %9 = vector.extract_strided_slice %7 {offsets = [0, 1, 0], sizes = [8, 16, 16], strides = [1, 1, 1]} : vector<8x18x16xf32> to vector<8x16x16xf32>
    %cst_3 = arith.constant 2.000000e+00 : f32
    %10 = vector.broadcast %cst_3 : f32 to vector<8x16x16xf32>
    %11 = arith.mulf %10, %9 : vector<8x16x16xf32>
    %12 = arith.addf %8, %11 : vector<8x16x16xf32>
    %13 = vector.extract_strided_slice %7 {offsets = [0, 2, 0], sizes = [8, 16, 16], strides = [1, 1, 1]} : vector<8x18x16xf32> to vector<8x16x16xf32>
    %14 = arith.addf %12, %13 : vector<8x16x16xf32>
    %15 = vector.extract_strided_slice %4 {offsets = [0, 2, 0], sizes = [8, 16, 18], strides = [1, 1, 1]} : vector<8x18x18xf32> to vector<8x16x18xf32>
    %16 = vector.extract_strided_slice %4 {offsets = [0, 0, 0], sizes = [8, 16, 18], strides = [1, 1, 1]} : vector<8x18x18xf32> to vector<8x16x18xf32>
    %17 = arith.subf %15, %16 : vector<8x16x18xf32>
    %18 = vector.extract_strided_slice %17 {offsets = [0, 0, 0], sizes = [8, 16, 16], strides = [1, 1, 1]} : vector<8x16x18xf32> to vector<8x16x16xf32>
    %19 = vector.extract_strided_slice %17 {offsets = [0, 0, 1], sizes = [8, 16, 16], strides = [1, 1, 1]} : vector<8x16x18xf32> to vector<8x16x16xf32>
    %cst_4 = arith.constant 2.000000e+00 : f32
    %20 = vector.broadcast %cst_4 : f32 to vector<8x16x16xf32>
    %21 = arith.mulf %20, %19 : vector<8x16x16xf32>
    %22 = arith.addf %18, %21 : vector<8x16x16xf32>
    %23 = vector.extract_strided_slice %17 {offsets = [0, 0, 2], sizes = [8, 16, 16], strides = [1, 1, 1]} : vector<8x16x18xf32> to vector<8x16x16xf32>
    %24 = arith.addf %22, %23 : vector<8x16x16xf32>
    %25 = arith.mulf %14, %14 : vector<8x16x16xf32>
    %26 = arith.mulf %24, %24 : vector<8x16x16xf32>
    %27 = arith.addf %25, %26 : vector<8x16x16xf32>
    %28 = math.sqrt %27 : vector<8x16x16xf32>
    %c0_5 = arith.constant 0 : index
    %c0_6 = arith.constant 0 : index
    %c0_7 = arith.constant 0 : index
    %29 = vector.load %arg2[%c0_5, %c0_6, %c0_7] : memref<8x16x16xf32, #tpu.memory_space<vmem>>, vector<8x16x16xf32>
    tpu.vector_store %arg2[%c0_5, %c0_6, %c0_7], %28 {strides = array<i32>} : memref<8x16x16xf32, #tpu.memory_space<vmem>>, vector<8x16x16xf32>,
    return
  }
  func.func @transform_0(%arg0: i32) -> (i32, i32, i32) {
    %c0_i32 = arith.constant 0 : i32
    %c0_i32_0 = arith.constant 0 : i32
    %c0_i32_1 = arith.constant 0 : i32
    return %arg0, %c0_i32, %c0_i32_0 : i32, i32, i32
  }
  func.func @transform_1(%arg0: i32) -> (i32, i32, i32) {
    %c0_i32 = arith.constant 0 : i32
    %c0_i32_0 = arith.constant 0 : i32
    %c0_i32_1 = arith.constant 0 : i32
    return %arg0, %c0_i32, %c0_i32_0 : i32, i32, i32
  }
}

</mosaic_0001>

<bundles_post_ra>
// kernel: tpu_custom_call.1
= control target key start
LH: loop header
LB: loop body
LE: loop exit
PB: predicated region body
PF: predicated region fallthrough
CT: control target
= control target key end

     0   :  { %6 = vsyncpa [#allocation3], 0  ;;  %s2279_s0 = inlined_call_operand.hbm [shape: f32[8,16,16], index: 0, kind: input, shape index: {}]   ;;  %s2280_s1 = inlined_call_operand.hbm [shape: f32[8,16,16], index: 1, kind: output, shape index: {}]  }
   0x1   :  { %7 = vsyncpa [#allocation4], 0  ;;  %s1391_s6 = smov [#allocation2]   ;;  %s1343_s10 = scalar_lea.hbm %s2279_s0, 2048 }
   0x2   :  { %s13_s7 = sshll.u32 %s1391_s6, 4  ;;  %p1344_p0 = scmp.ne.s32.totalorder %s2279_s0, %s1343_s10  ;;  %s14_s7 = int_to_ptr.vmem [resolvable:$true] %s13_s7 }
   0x3   :  { %p1347_p1 = scmp.lt.u32.totalorder %s1343_s10, %s2279_s0 }
   0x5   :  { %p1349_p2 = pnand %p1347_p1, %p1344_p0 }
   0x7   :  { %1352 = shalt.err (!%p1349_p2)
}
   0x8   :  { %s1353_s15 = scalar_lea.vmem %s14_s7, 2048  ;;  %p1358_p4 = scmp.lt.s32.totalorder %s14_s7, %s14_s7 }
   0x9   :  { %p1354_p3 = scmp.ne.s32.totalorder %s14_s7, %s1353_s15  ;;  %p1359_p5 = scmp.lt.s32.totalorder %s1353_s15, %s1353_s15 }
   0xb   :  { %p1360_p6 = por %p1359_p5, %p1358_p4 }
   0xd   :  { %p1361_p7 = pnand %p1360_p6, %p1354_p3 }
   0xf   :  { %1364 = shalt.err (!%p1361_p7)
}
  0x10   :  { %s1392_s16 = smov 128   ;;  %s1393_s17 = smov 8  }
  0x11   :  { %19 = dma.hbm_to_vmem [thread:$0]  %s2279_s0, 2048, %s14_s7, [#allocation3], %s1392_s16, %s1392_s16, %s1393_s17  }
  0x12   :  { %1387 = dma.done.wait [#allocation3], 2048  }
  0x13   :  { %1388 = vsyncadd [#allocation3], 4294965248  ;;  %v25_v0 = vld [vmem:[#allocation2 + $0x10] sm:$0xff]  ;;  %vm55_vm0 = vcmask 1040384   ;;  %v23_v1 = vld [vmem:[#allocation2] sm:$0xff]  ;;  %s1394_s0 = smov 1  }
  0x14   :  { %v1424_v2 = vld [vmem:[#allocation2 + $0x18] sm:$0xff]  ;;  %v59_v3 = vrot.slane %v25_v0, 7  ;;  %v56_v4 = vrot.slane %v23_v1, 7  ;;  %v24_v6 = vld [vmem:[#allocation2 + $0x8] sm:$0xff]  ;;  %v27_v8 = vld [vmem:[#allocation2 + $0x20] sm:$0xff]  ;;  %vm200_vm1 = vcmask 7168  }
  0x15   :  { %v60_v5 = vrot.slane %v1424_v2, 7  ;;  %v57_v7 = vrot.slane %v24_v6, 7  ;;  %v28_v9 = vld [vmem:[#allocation2 + $0x28] sm:$0xff]  ;;  %v62_v14 = vrot.slane %v27_v8, 7  ;;  %v29_v16 = vld [vmem:[#allocation2 + $0x30] sm:$0xff]  ;;  %v30_v17 = vld [vmem:[#allocation2 + $0x38] sm:$0xff] }
  0x16   :  { %v97_v10 = vsel %vm55_vm0, 0.0, %v59_v3  ;;  %v96_v11 = vsel %vm55_vm0, 0.0, %v56_v4  ;;  %v63_v15 = vrot.slane %v28_v9, 7  ;;  %v65_v20 = vrot.slane %v29_v16, 7  ;;  %v31_v22 = vld [vmem:[#allocation2 + $0x40] sm:$0xff]  ;;  %v32_v23 = vld [vmem:[#allocation2 + $0x48] sm:$0xff] }
  0x17   :  { %134 = vrot.lane.b32.xlu1 %v97_v10, %s1394_s0  ;;  %128 = vrot.lane.b32.xlu0 %v96_v11, %s1394_s0  ;;  %v61_v12 = vsel %vm55_vm0, %v59_v3, %v60_v5  ;;  %v58_v13 = vsel %vm55_vm0, %v56_v4, %v57_v7  ;;  %v98_v19 = vsel %vm55_vm0, 0.0, %v62_v14  ;;  %v66_v21 = vrot.slane %v30_v17, 7  ;;  %v33_v28 = vld [vmem:[#allocation2 + $0x50] sm:$0xff]  ;;  %v34_v29 = vld [vmem:[#allocation2 + $0x58] sm:$0xff]  ;;  %v35_v34 = vld [vmem:[#allocation2 + $0x60] sm:$0xff]  ;;  %s1395_s20 = smov 2  }
  0x18   :  { %v64_v18 = vsel %vm55_vm0, %v62_v14, %v63_v15  ;;  %v99_v25 = vsel %vm55_vm0, 0.0, %v65_v20  ;;  %v68_v26 = vrot.slane %v31_v22, 7  ;;  %v69_v27 = vrot.slane %v32_v23, 7  ;;  %v36_v35 = vld [vmem:[#allocation2 + $0x68] sm:$0xff]  ;;  %v37_v40 = vld [vmem:[#allocation2 + $0x70] sm:$0xff]  ;;  %v38_v41 = vld [vmem:[#allocation2 + $0x78] sm:$0xff] }
  0x19   :  { %v67_v24 = vsel %vm55_vm0, %v65_v20, %v66_v21  ;;  %v71_v32 = vrot.slane %v33_v28, 7  ;;  %v72_v33 = vrot.slane %v34_v29, 7  ;;  %v74_v38 = vrot.slane %v35_v34, 7  ;;  %s1396_s21 = smov 126   ;;  %s1397_s22 = smov 127  }
  0x1a   :  { %v70_v30 = vsel %vm55_vm0, %v68_v26, %v69_v27  ;;  %v100_v31 = vsel %vm55_vm0, 0.0, %v68_v26  ;;  %v75_v39 = vrot.slane %v36_v35, 7  ;;  %v77_v44 = vrot.slane %v37_v40, 7  ;;  %s1398_s23 = smov [#allocation5]  }
  0x1b   :  { %136 = vrot.lane.b32.xlu1 %v61_v12, %s1394_s0  ;;  %130 = vrot.lane.b32.xlu0 %v58_v13, %s1394_s0  ;;  %v73_v36 = vsel %vm55_vm0, %v71_v32, %v72_v33  ;;  %v101_v37 = vsel %vm55_vm0, 0.0, %v71_v32  ;;  %v102_v43 = vsel %vm55_vm0, 0.0, %v74_v38  ;;  %v78_v45 = vrot.slane %v38_v41, 7  ;;  %s1291_s24 = sshll.u32 %s1398_s23, 4  ;;  %s1292_s24 = int_to_ptr.vmem [resolvable:$true] %s1291_s24 }
  0x1c   :  { %v76_v42 = vsel %vm55_vm0, %v74_v38, %v75_v39  ;;  %v103_v47 = vsel %vm55_vm0, 0.0, %v77_v44  ;;  %v105_v48 = vsel %vm55_vm0, %v60_v5, 0.0  ;;  %v104_v49 = vsel %vm55_vm0, %v57_v7, 0.0  ;;  %s1365_s25 = scalar_lea.vmem %s1292_s24, 2048  ;;  %p1370_p9 = scmp.lt.s32.totalorder %s1292_s24, %s1292_s24 }
  0x1d   :  { %v79_v46 = vsel %vm55_vm0, %v77_v44, %v78_v45  ;;  %v107_v50 = vsel %vm55_vm0, %v66_v21, 0.0  ;;  %v106_v51 = vsel %vm55_vm0, %v63_v15, 0.0  ;;  %v109_v52 = vsel %vm55_vm0, %v72_v33, 0.0  ;;  %p1366_p8 = scmp.ne.s32.totalorder %s1292_s24, %s1365_s25  ;;  %p1371_p10 = scmp.lt.s32.totalorder %s1365_s25, %s1365_s25 }
  0x1e   :  { %v108_v53 = vsel %vm55_vm0, %v69_v27, 0.0  ;;  %v111_v54 = vsel %vm55_vm0, %v78_v45, 0.0  ;;  %v110_v55 = vsel %vm55_vm0, %v75_v39, 0.0  ;;  %vm225_vm2 = vcmask 138240  }
  0x1f   :  { %142 = vrot.lane.b32.xlu1 %v64_v18, %s1394_s0  ;;  %140 = vrot.lane.b32.xlu0 %v98_v19, %s1394_s0  ;;  %vm588_vm3 = vcmask 1041408   ;;  %vm515_vm4 = vcmask 1045504   ;;  %vm418_vm5 = vcmask 1046528   ;;  %p1372_p11 = por %p1371_p10, %p1370_p9 }
  0x21   :  { %p1373_p12 = pnand %p1372_p11, %p1366_p8 }
  0x23   :  { %148 = vrot.lane.b32.xlu1 %v67_v24, %s1394_s0  ;;  %146 = vrot.lane.b32.xlu0 %v99_v25, %s1394_s0 }
  0x27   :  { %154 = vrot.lane.b32.xlu1 %v70_v30, %s1394_s0  ;;  %152 = vrot.lane.b32.xlu0 %v100_v31, %s1394_s0 }
  0x2b   :  { %160 = vrot.lane.b32.xlu1 %v73_v36, %s1394_s0  ;;  %158 = vrot.lane.b32.xlu0 %v101_v37, %s1394_s0 }
  0x2f   :  { %166 = vrot.lane.b32.xlu1 %v76_v42, %s1394_s0  ;;  %164 = vrot.lane.b32.xlu0 %v102_v43, %s1394_s0 }
  0x33   :  { %172 = vrot.lane.b32.xlu1 %v79_v46, %s1394_s0  ;;  %170 = vrot.lane.b32.xlu0 %v103_v47, %s1394_s0 }
  0x37   :  { %138 = vrot.lane.b32.xlu1 %v105_v48, %s1394_s0  ;;  %132 = vrot.lane.b32.xlu0 %v104_v49, %s1394_s0 }
  0x3b   :  { %150 = vrot.lane.b32.xlu1 %v107_v50, %s1394_s0  ;;  %144 = vrot.lane.b32.xlu0 %v106_v51, %s1394_s0 }
  0x3f   :  { %162 = vrot.lane.b32.xlu1 %v109_v52, %s1394_s0  ;;  %156 = vrot.lane.b32.xlu0 %v108_v53, %s1394_s0 }
  0x43   :  { %174 = vrot.lane.b32.xlu1 %v111_v54, %s1394_s0  ;;  %168 = vrot.lane.b32.xlu0 %v110_v55, %s1394_s0 }
  0x89   :  { %v135_v56 = vpop.permute.xlu1 %134  ;;  %v129_v57 = vpop.permute.xlu0 %128 }
  0x8a   :  { %v201_v58 = vsel %vm200_vm1, 0.0, %v129_v57  ;;  %v204_v60 = vsel %vm200_vm1, 0.0, %v135_v56 }
  0x8b   :  { %v1477_v59 = vsel %vm225_vm2, %v201_v58, 0.0  ;;  %v1484_v0 = vsel %vm225_vm2, %v204_v60, 0.0 }
  0x8c   :  { %2307 = vst [vmem:[#allocation8_spill] sm:$0xff] %v1477_v59  ;;  %274 = vrot.lane.b32.xlu0 %v1477_v59, %s1395_s20  ;;  %2308 = vst [vmem:[#allocation9_spill] sm:$0xff] %v1484_v0  ;;  %v592_v4 = vrot.slane %v1484_v0, 6  ;;  %v589_v35 = vrot.slane %v1477_v59, 6 }
  0x8d   :  { %v137_v61 = vpop.permute.xlu1 %136  ;;  %v131_v62 = vpop.permute.xlu0 %130 }
  0x8e   :  { %v202_v63 = vsel %vm200_vm1, 0.0, %v131_v62  ;;  %v1497_v7 = vsub.f32 %v1484_v0, %v592_v4  ;;  %v205_v20 = vsel %vm200_vm1, 0.0, %v137_v61  ;;  %v1556_v46 = vsub.f32 %v1477_v59, %v589_v35 }
  0x8f   :  { %v1487_v1 = vsel %vm225_vm2, %v202_v63, 0.0  ;;  %v1520_v26 = vsel %vm225_vm2, %v205_v20, 0.0 }
  0x90   :  { %2309 = vst [vmem:[#allocation10_spill] sm:$0xff] %v1487_v1  ;;  %276 = vrot.lane.b32.xlu1 %v1487_v1, %s1395_s20  ;;  %2313 = vst [vmem:[#allocation14_spill] sm:$0xff] %v1520_v26  ;;  %v593_v34 = vrot.slane %v1520_v26, 6  ;;  %v590_v50 = vrot.slane %v1487_v1, 6 }
  0x91   :  { %v143_v2 = vpop.permute.xlu1 %142  ;;  %v141_v3 = vpop.permute.xlu0 %140 }
  0x92   :  { %v207_v38 = vsel %vm200_vm1, 0.0, %v141_v3  ;;  %v208_v51 = vsel %vm200_vm1, 0.0, %v143_v2 }
  0x93   :  { %v1559_v47 = vsel %vm225_vm2, %v207_v38, 0.0 }
  0x94   :  { %280 = vrot.lane.b32.xlu1 %v1484_v0, %s1395_s20  ;;  %2319 = vst [vmem:[#allocation20_spill] sm:$0xff] %v1559_v47  ;;  %v595_v60 = vrot.slane %v1559_v47, 6 }
  0x95   :  { %v149_v5 = vpop.permute.xlu1 %148  ;;  %v147_v6 = vpop.permute.xlu0 %146 }
  0x96   :  { %v210_v23 = vsel %vm200_vm1, 0.0, %v147_v6  ;;  %v211_v39 = vsel %vm200_vm1, 0.0, %v149_v5  ;;  %v1599_v5 = vsel %vm225_vm2, %v208_v51, 0.0 }
  0x97   :  { %v1529_v29 = vsel %vm225_vm2, %v210_v23, 0.0  ;;  %v1562_v48 = vsel %vm225_vm2, %v211_v39, 0.0  ;;  %2324 = vst [vmem:[#allocation25_spill] sm:$0xff] %v1599_v5 }
  0x98   :  { %835 = vrot.lane.b32.xlu1 %v1497_v7, %s1396_s21  ;;  %2316 = vst [vmem:[#allocation17_spill] sm:$0xff] %v1529_v29  ;;  %v598_v41 = vrot.slane %v1529_v29, 6  ;;  %2320 = vst [vmem:[#allocation21_spill] sm:$0xff] %v1562_v48  ;;  %v599_v58 = vrot.slane %v1562_v48, 6 }
  0x99   :  { %v1501_v8 = vpop.permute.xlu1 %154  ;;  %v153_v9 = vpop.permute.xlu0 %152 }
  0x9a   :  { %v1569_v49 = vsub.f32 %v1529_v29, %v598_v41  ;;  %v213_v62 = vsel %vm200_vm1, 0.0, %v153_v9  ;;  %v600_v51 = vsel %vm588_vm3, %v598_v41, %v599_v58  ;;  %v661_v41 = vmul.f32 2.0, %v1556_v46 }
  0x9d   :  { %v161_v10 = vpop.permute.xlu1 %160  ;;  %v159_v11 = vpop.permute.xlu0 %158 }
  0x9e   :  { %v217_v12 = vsel %vm200_vm1, 0.0, %v161_v10  ;;  %v216_v44 = vsel %vm200_vm1, 0.0, %v159_v11  ;;  %v214_v11 = vsel %vm200_vm1, 0.0, %v1501_v8 }
  0x9f   :  { %v1505_v13 = vsel %vm225_vm2, %v217_v12, 0.0  ;;  %v1574_v52 = vsel %vm225_vm2, %v216_v44, 0.0  ;;  %v1632_v23 = vsel %vm225_vm2, %v214_v11, 0.0  ;;  %v594_v44 = vsel %vm588_vm3, %v592_v4, %v593_v34 }
  0xa0   :  { %2310 = vst [vmem:[#allocation11_spill] sm:$0xff] %v1505_v13  ;;  %2321 = vst [vmem:[#allocation22_spill] sm:$0xff] %v1574_v52  ;;  %v604_v3 = vrot.slane %v1574_v52, 6  ;;  %v664_v4 = vmul.f32 2.0, %v1497_v7 }
  0xa1   :  { %v167_v14 = vpop.permute.xlu1 %166  ;;  %v165_v15 = vpop.permute.xlu0 %164  ;;  %2329 = vst [vmem:[#allocation30_spill] sm:$0xff] %v1632_v23 }
  0xa2   :  { %v220_v16 = vsel %vm200_vm1, 0.0, %v167_v14  ;;  %v219_v17 = vsel %vm200_vm1, 0.0, %v165_v15  ;;  %v1608_v14 = vsub.f32 %v1559_v47, %v595_v60  ;;  %v1611_v15 = vsel %vm225_vm2, %v213_v62, 0.0 }
  0xa3   :  { %v1510_v18 = vsel %vm225_vm2, %v220_v16, 0.0  ;;  %v1513_v19 = vsel %vm225_vm2, %v219_v17, 0.0  ;;  %2325 = vst [vmem:[#allocation26_spill] sm:$0xff] %v1611_v15  ;;  %v1627_v20 = vsub.f32 %v1574_v52, %v604_v3 }
  0xa4   :  { %2311 = vst [vmem:[#allocation12_spill] sm:$0xff] %v1510_v18  ;;  %2312 = vst [vmem:[#allocation13_spill] sm:$0xff] %v1513_v19  ;;  %v667_v62 = vmul.f32 2.0, %v1608_v14 }
  0xa5   :  { %v173_v21 = vpop.permute.xlu1 %172  ;;  %v171_v22 = vpop.permute.xlu0 %170 }
  0xa6   :  { %v223_v24 = vsel %vm200_vm1, 0.0, %v173_v21  ;;  %v222_v25 = vsel %vm200_vm1, 0.0, %v171_v22  ;;  %v596_v21 = vrot.slane %v1599_v5, 6  ;;  %v591_v22 = vsel %vm588_vm3, %v589_v35, %v590_v50 }
  0xa7   :  { %v1523_v27 = vsel %vm225_vm2, %v223_v24, 0.0  ;;  %v1526_v28 = vsel %vm225_vm2, %v222_v25, 0.0  ;;  %v601_v25 = vrot.slane %v1611_v15, 6 }
  0xa8   :  { %2314 = vst [vmem:[#allocation15_spill] sm:$0xff] %v1523_v27  ;;  %2315 = vst [vmem:[#allocation16_spill] sm:$0xff] %v1526_v28 }
  0xa9   :  { %v139_v30 = vpop.permute.xlu1 %138  ;;  %v133_v31 = vpop.permute.xlu0 %132  ;;  %v1651_v35 = vsub.f32 %v1611_v15, %v601_v25 }
  0xaa   :  { %v206_v32 = vsel %vm200_vm1, 0.0, %v139_v30  ;;  %v203_v33 = vsel %vm200_vm1, 0.0, %v133_v31  ;;  %v1644_v31 = vsub.f32 %v1487_v1, %v591_v22  ;;  %v611_v22 = vrot.slane %v1523_v27, 6 }
  0xab   :  { %v1536_v36 = vsel %vm225_vm2, %v206_v32, 0.0  ;;  %v1539_v37 = vsel %vm225_vm2, %v203_v33, 0.0  ;;  %v597_v32 = vsel %vm588_vm3, %v595_v60, %v596_v21  ;;  %v602_v33 = vrot.slane %v1632_v23, 6 }
  0xac   :  { %2317 = vst [vmem:[#allocation18_spill] sm:$0xff] %v1536_v36  ;;  %2318 = vst [vmem:[#allocation19_spill] sm:$0xff] %v1539_v37  ;;  %278 = vrot.lane.b32.xlu0 %v1539_v37, %s1395_s20  ;;  %v1548_v40 = vsub.f32 %v1536_v36, %v593_v34  ;;  %v1583_v57 = vsub.f32 %v1539_v37, %v590_v50  ;;  %v1659_v39 = vsub.f32 %v1599_v5, %v597_v32 }
  0xad   :  { %v151_v42 = vpop.permute.xlu1 %150  ;;  %v145_v43 = vpop.permute.xlu0 %144  ;;  %v1680_v50 = vsub.f32 %v1520_v26, %v594_v44  ;;  %v1690_v34 = vsub.f32 %v1562_v48, %v600_v51  ;;  %v605_v60 = vrot.slane %v1505_v13, 6  ;;  %v608_v44 = vrot.slane %v1510_v18, 6 }
  0xae   :  { %v212_v45 = vsel %vm200_vm1, 0.0, %v151_v42  ;;  %839 = vrot.lane.b32.xlu1 %v1548_v40, %s1396_s21  ;;  %v209_v63 = vsel %vm200_vm1, 0.0, %v145_v43  ;;  %v603_v42 = vsel %vm588_vm3, %v601_v25, %v602_v33  ;;  %v673_v25 = vmul.f32 2.0, %v1651_v35 }
  0xaf   :  { %v1577_v53 = vsel %vm225_vm2, %v212_v45, 0.0  ;;  %v1614_v16 = vsel %vm225_vm2, %v209_v63, 0.0  ;;  %v1675_v45 = vsub.f32 %v1632_v23, %v603_v42  ;;  %v610_v63 = vrot.slane %v1526_v28, 6 }
  0xb0   :  { %829 = vrot.lane.b32.xlu0 %v1556_v46, %s1396_s21  ;;  %2322 = vst [vmem:[#allocation23_spill] sm:$0xff] %v1577_v53  ;;  %v1595_v2 = vsub.f32 %v1577_v53, %v599_v58  ;;  %2326 = vst [vmem:[#allocation27_spill] sm:$0xff] %v1614_v16  ;;  %v1637_v24 = vsub.f32 %v1614_v16, %v596_v21  ;;  %v607_v21 = vrot.slane %v1513_v19, 6 }
  0xb1   :  { %v163_v54 = vpop.permute.xlu1 %162  ;;  %v157_v55 = vpop.permute.xlu0 %156 }
  0xb2   :  { %v218_v56 = vsel %vm200_vm1, 0.0, %v163_v54  ;;  %847 = vrot.lane.b32.xlu1 %v1569_v49, %s1396_s21  ;;  %v215_v30 = vsel %vm200_vm1, 0.0, %v157_v55  ;;  %v666_v54 = vmul.f32 2.0, %v1548_v40  ;;  %v670_v55 = vmul.f32 2.0, %v1569_v49 }
  0xb3   :  { %v1588_v61 = vsel %vm225_vm2, %v218_v56, 0.0  ;;  %v1654_v38 = vsel %vm225_vm2, %v215_v30, 0.0  ;;  %v663_v56 = vmul.f32 2.0, %v1583_v57  ;;  %v672_v58 = vmul.f32 2.0, %v1595_v2 }
  0xb4   :  { %2323 = vst [vmem:[#allocation24_spill] sm:$0xff] %v1588_v61  ;;  %833 = vrot.lane.b32.xlu0 %v1583_v57, %s1396_s21  ;;  %2330 = vst [vmem:[#allocation31_spill] sm:$0xff] %v1654_v38  ;;  %v1665_v43 = vsub.f32 %v1654_v38, %v602_v33  ;;  %v669_v11 = vmul.f32 2.0, %v1637_v24  ;;  %v1729_v33 = vsub.f32 %v1513_v19, %v607_v21 }
  0xb5   :  { %v175_v6 = vpop.permute.xlu1 %174  ;;  %v169_v10 = vpop.permute.xlu0 %168 }
  0xb6   :  { %v224_v9 = vsel %vm200_vm1, 0.0, %v175_v6  ;;  %v221_v12 = vsel %vm200_vm1, 0.0, %v169_v10  ;;  %851 = vrot.lane.b32.xlu1 %v1595_v2, %s1396_s21  ;;  %v1708_v6 = vsub.f32 %v1588_v61, %v605_v60  ;;  %v676_v10 = vmul.f32 2.0, %v1627_v20 }
  0xb7   :  { %v1617_v17 = vsel %vm225_vm2, %v224_v9, 0.0  ;;  %v1620_v8 = vsel %vm225_vm2, %v221_v12, 0.0  ;;  %v1715_v9 = vsub.f32 %v1526_v28, %v610_v63  ;;  %v675_v42 = vmul.f32 2.0, %v1665_v43 }
  0xb8   :  { %2327 = vst [vmem:[#allocation28_spill] sm:$0xff] %v1617_v17  ;;  %2328 = vst [vmem:[#allocation29_spill] sm:$0xff] %v1620_v8  ;;  %841 = vrot.lane.b32.xlu0 %v1608_v14, %s1396_s21  ;;  %v678_v12 = vmul.f32 2.0, %v1708_v6  ;;  %v1724_v30 = vsub.f32 %v1617_v17, %v611_v22 }
  0xb9   :  { %v682_v32 = vmul.f32 2.0, %v1715_v9 }
  0xba   :  { %859 = vrot.lane.b32.xlu1 %v1627_v20, %s1396_s21  ;;  %2331 = vst [vmem:[#allocation32_spill] sm:$0xff] %v1724_v30  ;;  %v684_v51 = vmul.f32 2.0, %v1724_v30 }
  0xbc   :  { %845 = vrot.lane.b32.xlu0 %v1637_v24, %s1396_s21 }
  0xbe   :  { %831 = vrot.lane.b32.xlu1 %v1644_v31, %s1396_s21 }
  0xc0   :  { %853 = vrot.lane.b32.xlu0 %v1651_v35, %s1396_s21 }
  0xc2   :  { %843 = vrot.lane.b32.xlu1 %v1659_v39, %s1396_s21 }
  0xc4   :  { %857 = vrot.lane.b32.xlu0 %v1665_v43, %s1396_s21 }
  0xc6   :  { %855 = vrot.lane.b32.xlu1 %v1675_v45, %s1396_s21 }
  0xc8   :  { %837 = vrot.lane.b32.xlu0 %v1680_v50, %s1396_s21 }
  0xca   :  { %715 = vrot.lane.b32.xlu1 %v664_v4, %s1397_s22  ;;  %v1737_v4 = vsub.f32 %v1620_v8, %v608_v44 }
  0xcc   :  { %849 = vrot.lane.b32.xlu0 %v1690_v34, %s1396_s21 }
  0xce   :  { %719 = vrot.lane.b32.xlu1 %v666_v54, %s1397_s22  ;;  %v679_v54 = vmul.f32 2.0, %v1729_v33 }
  0xd0   :  { %709 = vrot.lane.b32.xlu0 %v661_v41, %s1397_s22  ;;  %v662_v41 = vmul.f32 2.0, %v1644_v31 }
  0xd2   :  { %727 = vrot.lane.b32.xlu1 %v670_v55, %s1397_s22  ;;  %v681_v55 = vmul.f32 2.0, %v1737_v4 }
  0xd4   :  { %713 = vrot.lane.b32.xlu0 %v663_v56, %s1397_s22  ;;  %v668_v56 = vmul.f32 2.0, %v1659_v39 }
  0xd6   :  { %731 = vrot.lane.b32.xlu1 %v672_v58, %s1397_s22  ;;  %v609_v58 = vsel %vm588_vm3, %v607_v21, %v608_v44 }
  0xd8   :  { %721 = vrot.lane.b32.xlu0 %v667_v62, %s1397_s22  ;;  %v665_v62 = vmul.f32 2.0, %v1680_v50 }
  0xda   :  { %739 = vrot.lane.b32.xlu1 %v676_v10, %s1397_s22  ;;  %v606_v10 = vsel %vm588_vm3, %v604_v3, %v605_v60 }
  0xdb   :  { %v1761_v21 = vsub.f32 %v1505_v13, %v606_v10 }
  0xdc   :  { %725 = vrot.lane.b32.xlu0 %v669_v11, %s1397_s22  ;;  %v674_v11 = vmul.f32 2.0, %v1675_v45 }
  0xdd   :  { %v677_v60 = vmul.f32 2.0, %v1761_v21 }
  0xde   :  { %743 = vrot.lane.b32.xlu1 %v678_v12, %s1397_s22  ;;  %v1756_v12 = vsub.f32 %v1510_v18, %v609_v58 }
  0xe0   :  { %733 = vrot.lane.b32.xlu0 %v673_v25, %s1397_s22  ;;  %v671_v25 = vmul.f32 2.0, %v1690_v34  ;;  %v680_v3 = vmul.f32 2.0, %v1756_v12 }
  0xe2   :  { %751 = vrot.lane.b32.xlu1 %v682_v32, %s1397_s22  ;;  %v612_v32 = vsel %vm588_vm3, %v610_v63, %v611_v22 }
  0xe4   :  { %737 = vrot.lane.b32.xlu0 %v675_v42, %s1397_s22  ;;  %v1769_v42 = vsub.f32 %v1523_v27, %v612_v32 }
  0xe6   :  { %755 = vrot.lane.b32.xlu1 %v684_v51, %s1397_s22  ;;  %2332 = vst [vmem:[#allocation33_spill] sm:$0xff] %v1769_v42  ;;  %v683_v44 = vmul.f32 2.0, %v1769_v42 }
  0xe8   :  { %745 = vrot.lane.b32.xlu0 %v679_v54, %s1397_s22 }
  0xea   :  { %711 = vrot.lane.b32.xlu1 %v662_v41, %s1397_s22 }
  0xec   :  { %749 = vrot.lane.b32.xlu0 %v681_v55, %s1397_s22 }
  0xee   :  { %723 = vrot.lane.b32.xlu1 %v668_v56, %s1397_s22 }
  0xf0   :  { %717 = vrot.lane.b32.xlu0 %v665_v62, %s1397_s22 }
  0xf2   :  { %735 = vrot.lane.b32.xlu1 %v674_v11, %s1397_s22 }
  0xf4   :  { %729 = vrot.lane.b32.xlu0 %v671_v25, %s1397_s22 }
  0xf6   :  { %747 = vrot.lane.b32.xlu1 %v680_v3, %s1397_s22 }
  0xf8   :  { %741 = vrot.lane.b32.xlu0 %v677_v60, %s1397_s22 }
  0xfa   :  { %863 = vrot.lane.b32.xlu1 %v1708_v6, %s1396_s21 }
  0xfc   :  { %753 = vrot.lane.b32.xlu0 %v683_v44, %s1397_s22 }
  0xfe   :  { %867 = vrot.lane.b32.xlu1 %v1756_v12, %s1396_s21  ;;  %v1808_v51 = vpop.permute.xlu0 %274 }
  0xff   :  { %2335 = vst [vmem:[#allocation36_spill] sm:$0xff] %v1808_v51 }
 0x100   :  { %861 = vrot.lane.b32.xlu0 %v1761_v21, %s1396_s21 }
 0x102   :  { %871 = vrot.lane.b32.xlu1 %v1715_v9, %s1396_s21  ;;  %v1794_v63 = vpop.permute.xlu1 %276 }
 0x103   :  { %2333 = vst [vmem:[#allocation34_spill] sm:$0xff] %v1794_v63 }
 0x104   :  { %865 = vrot.lane.b32.xlu0 %v1729_v33, %s1396_s21 }
 0x106   :  { %875 = vrot.lane.b32.xlu1 %v1724_v30, %s1396_s21  ;;  %v1802_v22 = vpop.permute.xlu1 %280 }
 0x107   :  { %2334 = vst [vmem:[#allocation35_spill] sm:$0xff] %v1802_v22 }
 0x108   :  { %869 = vrot.lane.b32.xlu0 %v1737_v4, %s1396_s21 }
 0x10a   :  { %284 = vrot.lane.b32.xlu1 %v1536_v36, %s1395_s20  ;;  %v836_v54 = vpop.permute.xlu1 %835 }
 0x10c   :  { %873 = vrot.lane.b32.xlu0 %v1769_v42, %s1396_s21 }
 0x10e   :  { %288 = vrot.lane.b32.xlu1 %v1599_v5, %s1395_s20 }
 0x110   :  { %282 = vrot.lane.b32.xlu0 %v1520_v26, %s1395_s20 }
 0x112   :  { %292 = vrot.lane.b32.xlu1 %v1529_v29, %s1395_s20 }
 0x114   :  { %286 = vrot.lane.b32.xlu0 %v1559_v47, %s1395_s20 }
 0x116   :  { %296 = vrot.lane.b32.xlu1 %v1577_v53, %s1395_s20 }
 0x118   :  { %290 = vrot.lane.b32.xlu0 %v1614_v16, %s1395_s20 }
 0x11a   :  { %300 = vrot.lane.b32.xlu1 %v1632_v23, %s1395_s20 }
 0x11c   :  { %294 = vrot.lane.b32.xlu0 %v1562_v48, %s1395_s20 }
 0x11e   :  { %304 = vrot.lane.b32.xlu1 %v1574_v52, %s1395_s20  ;;  %v1816_v41 = vpop.permute.xlu0 %278 }
 0x11f   :  { %2336 = vst [vmem:[#allocation37_spill] sm:$0xff] %v1816_v41 }
 0x120   :  { %v840_v55 = vpop.permute.xlu1 %839  ;;  %298 = vrot.lane.b32.xlu0 %v1611_v15, %s1395_s20 }
 0x122   :  { %308 = vrot.lane.b32.xlu1 %v1588_v61, %s1395_s20  ;;  %v830_v56 = vpop.permute.xlu0 %829 }
 0x124   :  { %v1822_v58 = vpop.permute.xlu1 %847  ;;  %302 = vrot.lane.b32.xlu0 %v1654_v38, %s1395_s20 }
 0x126   :  { %312 = vrot.lane.b32.xlu1 %v1510_v18, %s1395_s20  ;;  %v834_v62 = vpop.permute.xlu0 %833 }
 0x128   :  { %v1828_v10 = vpop.permute.xlu1 %851  ;;  %306 = vrot.lane.b32.xlu0 %v1505_v13, %s1395_s20 }
 0x12a   :  { %316 = vrot.lane.b32.xlu1 %v1526_v28, %s1395_s20  ;;  %v1834_v11 = vpop.permute.xlu0 %841 }
 0x12c   :  { %v1836_v25 = vpop.permute.xlu1 %859  ;;  %310 = vrot.lane.b32.xlu0 %v1513_v19, %s1395_s20 }
 0x12e   :  { %320 = vrot.lane.b32.xlu1 %v1617_v17, %s1395_s20  ;;  %v846_v32 = vpop.permute.xlu0 %845 }
 0x130   :  { %v832_v3 = vpop.permute.xlu1 %831  ;;  %314 = vrot.lane.b32.xlu0 %v1620_v8, %s1395_s20 }
 0x132   :  { %v1844_v60 = vpop.permute.xlu0 %853 }
 0x134   :  { %v844_v44 = vpop.permute.xlu1 %843  ;;  %318 = vrot.lane.b32.xlu0 %v1523_v27, %s1395_s20 }
 0x136   :  { %v1848_v28 = vpop.permute.xlu0 %857 }
 0x138   :  { %v1850_v18 = vpop.permute.xlu1 %855 }
 0x13a   :  { %v838_v13 = vpop.permute.xlu0 %837 }
 0x13c   :  { %v716_v19 = vpop.permute.xlu1 %715 }
 0x13d   :  { %v784_v1 = vadd.f32 %v716_v19, %v1497_v7 }
 0x13e   :  { %v1852_v61 = vpop.permute.xlu0 %849 }
 0x140   :  { %v720_v17 = vpop.permute.xlu1 %719 }
 0x141   :  { %v786_v37 = vadd.f32 %v720_v17, %v1548_v40 }
 0x142   :  { %v710_v38 = vpop.permute.xlu0 %709 }
 0x143   :  { %v781_v47 = vadd.f32 %v710_v38, %v1556_v46  ;;  %v906_v46 = vadd.f32 %v840_v55, %v786_v37 }
 0x144   :  { %v728_v52 = vpop.permute.xlu1 %727 }
 0x145   :  { %v901_v26 = vadd.f32 %v830_v56, %v781_v47  ;;  %v904_v56 = vadd.f32 %v836_v54, %v784_v1  ;;  %v946_v19 = vmul.f32 %v906_v46, %v906_v46  ;;  %v790_v1 = vadd.f32 %v728_v52, %v1569_v49 }
 0x146   :  { %v714_v15 = vpop.permute.xlu0 %713 }
 0x147   :  { %v783_v0 = vadd.f32 %v714_v15, %v1583_v57  ;;  %v941_v42 = vmul.f32 %v901_v26, %v901_v26 }
 0x148   :  { %v732_v23 = vpop.permute.xlu1 %731 }
 0x149   :  { %v903_v41 = vadd.f32 %v834_v62, %v783_v0  ;;  %v989_v17 = vrot.slane %v941_v42, 2  ;;  %v792_v37 = vadd.f32 %v732_v23, %v1595_v2  ;;  %v997_v23 = vrot.slane %v946_v19, 2 }
 0x14a   :  { %v722_v8 = vpop.permute.xlu0 %721 }
 0x14b   :  { %v943_v38 = vmul.f32 %v903_v41, %v903_v41  ;;  %v787_v0 = vadd.f32 %v722_v8, %v1608_v14 }
 0x14c   :  { %v1854_v53 = vpop.permute.xlu1 %739 }
 0x14d   :  { %v992_v26 = vrot.slane %v943_v38, 2  ;;  %v907_v14 = vadd.f32 %v1834_v11, %v787_v0 }
 0x14e   :  { %v726_v29 = vpop.permute.xlu0 %725 }
 0x14f   :  { %v789_v15 = vadd.f32 %v726_v29, %v1637_v24 }
 0x150   :  { %v1856_v48 = vpop.permute.xlu1 %743 }
 0x151   :  { %v909_v41 = vadd.f32 %v846_v32, %v789_v15  ;;  %v910_v32 = vadd.f32 %v1822_v58, %v790_v1 }
 0x152   :  { %v734_v27 = vpop.permute.xlu0 %733 }
 0x153   :  { %v949_v49 = vmul.f32 %v909_v41, %v909_v41  ;;  %v950_v58 = vmul.f32 %v910_v32, %v910_v32 }
 0x154   :  { %v1858_v16 = vpop.permute.xlu1 %751 }
 0x156   :  { %v738_v5 = vpop.permute.xlu0 %737 }
 0x157   :  { %v795_v52 = vadd.f32 %v738_v5, %v1665_v43 }
 0x158   :  { %v1862_v22 = vpop.permute.xlu1 %755 }
 0x159   :  { %2337 = vst [vmem:[#allocation38_spill] sm:$0xff] %v1862_v22  ;;  %v915_v15 = vadd.f32 %v1848_v28, %v795_v52  ;;  %v2338_v52 = vld [vmem:[#allocation32_spill] sm:$0xff] }
 0x15a   :  { %v1864_v36 = vpop.permute.xlu0 %745 }
 0x15c   :  { %v712_v59 = vpop.permute.xlu1 %711 }
 0x15d   :  { %v782_v51 = vadd.f32 %v712_v59, %v1644_v31 }
 0x15e   :  { %v1869_v63 = vpop.permute.xlu0 %749 }
 0x15f   :  { %v902_v30 = vadd.f32 %v832_v3, %v782_v51  ;;  %v947_v3 = vmul.f32 %v907_v14, %v907_v14 }
 0x160   :  { %v724_v57 = vpop.permute.xlu1 %723 }
 0x161   :  { %v942_v22 = vmul.f32 %v902_v30, %v902_v30  ;;  %v788_v47 = vadd.f32 %v724_v57, %v1659_v39  ;;  %v944_v39 = vmul.f32 %v904_v56, %v904_v56  ;;  %v798_v56 = vadd.f32 %v1856_v48, %v1708_v6 }
 0x162   :  { %v718_v40 = vpop.permute.xlu0 %717 }
 0x163   :  { %v990_v59 = vrot.slane %v942_v22, 2  ;;  %v908_v31 = vadd.f32 %v844_v44, %v788_v47  ;;  %v785_v7 = vadd.f32 %v718_v40, %v1680_v50  ;;  %v912_v22 = vadd.f32 %v1828_v10, %v792_v37 }
 0x164   :  { %v736_v51 = vpop.permute.xlu1 %735  ;;  %v994_v11 = vrot.slane %v944_v39, 2  ;;  %v799_v39 = vadd.f32 %v1864_v36, %v1729_v33 }
 0x165   :  { %v905_v29 = vadd.f32 %v838_v13, %v785_v7  ;;  %v991_v24 = vsel %vm515_vm4, %v989_v17, %v990_v59  ;;  %v993_v8 = vsel %vm515_vm4, %v990_v59, %v992_v26  ;;  %v948_v30 = vmul.f32 %v908_v31, %v908_v31 }
 0x166   :  { %1029 = vrot.lane.b32.xlu0 %v991_v24, %s1395_s20  ;;  %v730_v50 = vpop.permute.xlu0 %729  ;;  %v794_v2 = vadd.f32 %v736_v51, %v1675_v45  ;;  %1031 = vrot.lane.b32.xlu1 %v993_v8, %s1395_s20  ;;  %v793_v45 = vadd.f32 %v734_v27, %v1651_v35  ;;  %v952_v43 = vmul.f32 %v912_v22, %v912_v22  ;;  %v999_v27 = vrot.slane %v947_v3, 2 }
 0x167   :  { %v945_v42 = vmul.f32 %v905_v29, %v905_v29  ;;  %v791_v13 = vadd.f32 %v730_v50, %v1690_v34  ;;  %v1000_v46 = vrot.slane %v948_v30, 2  ;;  %v796_v35 = vadd.f32 %v1854_v53, %v1627_v20 }
 0x168   :  { %v748_v54 = vpop.permute.xlu1 %747  ;;  %v914_v34 = vadd.f32 %v1850_v18, %v794_v2  ;;  %v913_v18 = vadd.f32 %v1844_v60, %v793_v45  ;;  %v1007_v31 = vrot.slane %v952_v43, 2  ;;  %v955_v7 = vmul.f32 %v915_v15, %v915_v15 }
 0x169   :  { %v995_v55 = vrot.slane %v945_v42, 2  ;;  %v911_v62 = vadd.f32 %v1852_v61, %v791_v13  ;;  %v1002_v61 = vrot.slane %v949_v49, 2  ;;  %v1001_v28 = vsel %vm515_vm4, %v999_v27, %v1000_v46 }
 0x16a   :  { %v742_v44 = vpop.permute.xlu0 %741  ;;  %v954_v0 = vmul.f32 %v914_v34, %v914_v34  ;;  %v1004_v20 = vrot.slane %v950_v58, 2  ;;  %v916_v60 = vadd.f32 %v1836_v25, %v796_v35  ;;  %v953_v48 = vmul.f32 %v913_v18, %v913_v18  ;;  %v2340_v34 = vld [vmem:[#allocation33_spill] sm:$0xff] }
 0x16b   :  { %v951_v38 = vmul.f32 %v911_v62, %v911_v62  ;;  %v998_v10 = vsel %vm515_vm4, %v995_v55, %v997_v23  ;;  %v996_v5 = vsel %vm515_vm4, %v994_v11, %v995_v55  ;;  %v1003_v17 = vsel %vm515_vm4, %v1000_v46, %v1002_v61  ;;  %v2339_v55 = vld [vmem:[#allocation38_spill] sm:$0xff] }
 0x16c   :  { %v864_v57 = vpop.permute.xlu1 %863  ;;  %1035 = vrot.lane.b32.xlu1 %v998_v10, %s1395_s20  ;;  %1033 = vrot.lane.b32.xlu0 %v996_v5, %s1395_s20  ;;  %v797_v19 = vadd.f32 %v742_v44, %v1761_v21  ;;  %v1010_v26 = vrot.slane %v954_v0, 2  ;;  %v800_v41 = vadd.f32 %v748_v54, %v1756_v12  ;;  %v1012_v21 = vrot.slane %v955_v7, 2 }
 0x16d   :  { %v1005_v40 = vrot.slane %v951_v38, 2  ;;  %v918_v53 = vadd.f32 %v864_v57, %v798_v56  ;;  %v956_v25 = vmul.f32 %v916_v60, %v916_v60  ;;  %v1009_v8 = vrot.slane %v953_v48, 2  ;;  %v2343_v60 = vld [vmem:[#allocation36_spill] sm:$0xff] }
 0x16e   :  { %v754_v47 = vpop.permute.xlu0 %753  ;;  %v1013_v12 = vsel %vm515_vm4, %v1010_v26, %v1012_v21  ;;  %v801_v23 = vadd.f32 %v1869_v63, %v1737_v4  ;;  %v802_v49 = vadd.f32 %v1858_v16, %v1715_v9  ;;  %v804_v62 = vadd.f32 %v2339_v55, %v2338_v52  ;;  %v2344_v48 = vld [vmem:[#allocation8_spill] sm:$0xff] }
 0x16f   :  { %v1008_v51 = vsel %vm515_vm4, %v1005_v40, %v1007_v31  ;;  %v1006_v24 = vsel %vm515_vm4, %v1004_v20, %v1005_v40  ;;  %v958_v1 = vmul.f32 %v918_v53, %v918_v53  ;;  %v1011_v13 = vsel %vm515_vm4, %v1009_v8, %v1010_v26  ;;  %v2342_v53 = vld [vmem:[#allocation10_spill] sm:$0xff]  ;;  %v2345_v26 = vld [vmem:[#allocation37_spill] sm:$0xff]  ;;  %v2351_v52 = vld [vmem:[#allocation20_spill] sm:$0xff] }
 0x170   :  { %v868_v59 = vpop.permute.xlu1 %867  ;;  %1039 = vrot.lane.b32.xlu1 %v1003_v17, %s1395_s20  ;;  %1037 = vrot.lane.b32.xlu0 %v1001_v28, %s1395_s20  ;;  %v1014_v54 = vrot.slane %v956_v25, 2  ;;  %v803_v38 = vadd.f32 %v754_v47, %v2340_v34 }
 0x171   :  { %v920_v50 = vadd.f32 %v868_v59, %v800_v41  ;;  %v1017_v36 = vrot.slane %v958_v1, 2 }
 0x172   :  { %v862_v6 = vpop.permute.xlu0 %861 }
 0x173   :  { %v917_v37 = vadd.f32 %v862_v6, %v797_v19  ;;  %v960_v11 = vmul.f32 %v920_v50, %v920_v50  ;;  %v2341_v19 = vld [vmem:[#allocation34_spill] sm:$0xff]  ;;  %v346_v6 = vsub.f32 %v2344_v48, %v2343_v60 }
 0x174   :  { %v872_v29 = vpop.permute.xlu1 %871  ;;  %1043 = vrot.lane.b32.xlu1 %v1008_v51, %s1395_s20  ;;  %1041 = vrot.lane.b32.xlu0 %v1006_v24, %s1395_s20  ;;  %v347_v20 = vsub.f32 %v2342_v53, %v2341_v19 }
 0x175   :  { %v957_v14 = vmul.f32 %v917_v37, %v917_v37  ;;  %v922_v44 = vadd.f32 %v872_v29, %v802_v49  ;;  %v1020_v16 = vrot.slane %v960_v11, 2  ;;  %v2346_v37 = vld [vmem:[#allocation19_spill] sm:$0xff]  ;;  %v370_v21 = vmul.f32 2.0, %v346_v6 }
 0x176   :  { %v866_v30 = vpop.permute.xlu0 %865  ;;  %v348_v51 = vsub.f32 %v2346_v37, %v2345_v26  ;;  %v371_v24 = vmul.f32 2.0, %v347_v20 }
 0x177   :  { %v1015_v42 = vrot.slane %v957_v14, 2  ;;  %v919_v2 = vadd.f32 %v866_v30, %v799_v39  ;;  %v962_v43 = vmul.f32 %v922_v44, %v922_v44  ;;  %v2347_v14 = vld [vmem:[#allocation14_spill] sm:$0xff]  ;;  %v419_v30 = vrot.slane %v370_v21, 1 }
 0x178   :  { %1047 = vrot.lane.b32.xlu1 %v1013_v12, %s1395_s20  ;;  %v876_v22 = vpop.permute.xlu1 %875  ;;  %1045 = vrot.lane.b32.xlu0 %v1011_v13, %s1395_s20  ;;  %v372_v39 = vmul.f32 2.0, %v348_v51  ;;  %v420_v1 = vrot.slane %v371_v24, 1  ;;  %v2349_v13 = vld [vmem:[#allocation35_spill] sm:$0xff] }
 0x179   :  { %v959_v33 = vmul.f32 %v919_v2, %v919_v2  ;;  %v1018_v45 = vsel %vm515_vm4, %v1015_v42, %v1017_v36  ;;  %v924_v4 = vadd.f32 %v876_v22, %v804_v62  ;;  %v1016_v63 = vsel %vm515_vm4, %v1014_v54, %v1015_v42  ;;  %v2348_v2 = vld [vmem:[#allocation18_spill] sm:$0xff] }
 0x17a   :  { %v870_v32 = vpop.permute.xlu0 %869  ;;  %v1024_v18 = vrot.slane %v962_v43, 2  ;;  %v422_v42 = vrot.slane %v372_v39, 1  ;;  %v421_v22 = vsel %vm418_vm5, %v419_v30, %v420_v1  ;;  %v517_v54 = vrot.slane %v347_v20, 2 }
 0x17b   :  { %v921_v3 = vadd.f32 %v870_v32, %v801_v23  ;;  %v1019_v46 = vrot.slane %v959_v33, 2  ;;  %v964_v61 = vmul.f32 %v924_v4, %v924_v4  ;;  %v2350_v23 = vld [vmem:[#allocation9_spill] sm:$0xff]  ;;  %v475_v44 = vadd.f32 %v421_v22, %v346_v6 }
 0x17c   :  { %1051 = vrot.lane.b32.xlu1 %v1018_v45, %s1395_s20  ;;  %1049 = vrot.lane.b32.xlu0 %v1016_v63, %s1395_s20  ;;  %v285_v17 = vpop.permute.xlu1 %284  ;;  %v349_v36 = vsub.f32 %v2350_v23, %v2349_v13  ;;  %v423_v11 = vsel %vm418_vm5, %v420_v1, %v422_v42  ;;  %v2352_v4 = vld [vmem:[#allocation25_spill] sm:$0xff] }
 0x17d   :  { %v961_v10 = vmul.f32 %v921_v3, %v921_v3  ;;  %v1021_v15 = vsel %vm515_vm4, %v1019_v46, %v1020_v16  ;;  %v1027_v47 = vrot.slane %v964_v61, 2  ;;  %v351_v12 = vsub.f32 %v2348_v2, %v285_v17  ;;  %v2354_v61 = vld [vmem:[#allocation21_spill] sm:$0xff]  ;;  %v2356_v17 = vld [vmem:[#allocation23_spill] sm:$0xff] }
 0x17e   :  { %v874_v9 = vpop.permute.xlu0 %873  ;;  %v373_v32 = vmul.f32 2.0, %v349_v36  ;;  %v519_v3 = vrot.slane %v348_v51, 2  ;;  %v516_v46 = vrot.slane %v346_v6, 2  ;;  %v521_v60 = vrot.slane %v349_v36, 2 }
 0x17f   :  { %v1022_v57 = vrot.slane %v961_v10, 2  ;;  %v923_v5 = vadd.f32 %v874_v9, %v803_v38  ;;  %v375_v49 = vmul.f32 2.0, %v351_v12  ;;  %v2353_v38 = vld [vmem:[#allocation27_spill] sm:$0xff]  ;;  %v524_v26 = vrot.slane %v351_v12, 2 }
 0x180   :  { %1053 = vrot.lane.b32.xlu0 %v1021_v15, %s1395_s20  ;;  %v289_v28 = vpop.permute.xlu1 %288  ;;  %v424_v43 = vrot.slane %v373_v32, 1 }
 0x181   :  { %v963_v58 = vmul.f32 %v923_v5, %v923_v5  ;;  %v1023_v27 = vsel %vm515_vm4, %v1020_v16, %v1022_v57  ;;  %v1957_v63 = vsub.f32 %v2352_v4, %v289_v28  ;;  %v476_v16 = vadd.f32 %v423_v11, %v347_v20  ;;  %v2359_v4 = vld [vmem:[#allocation22_spill] sm:$0xff] }
 0x182   :  { %1055 = vrot.lane.b32.xlu1 %v1023_v27, %s1395_s20  ;;  %v283_v40 = vpop.permute.xlu0 %282  ;;  %v427_v9 = vrot.slane %v375_v49, 1  ;;  %v518_v5 = vsel %vm515_vm4, %v516_v46, %v517_v54  ;;  %v2358_v49 = vld [vmem:[#allocation26_spill] sm:$0xff] }
 0x183   :  { %v1025_v35 = vrot.slane %v963_v58, 2  ;;  %v1943_v25 = vsub.f32 %v2347_v14, %v283_v40  ;;  %v520_v58 = vsel %vm515_vm4, %v517_v54, %v519_v3  ;;  %v572_v27 = vadd.f32 %v518_v5, %v475_v44  ;;  %v2357_v14 = vld [vmem:[#allocation30_spill] sm:$0xff] }
 0x184   :  { %v293_v7 = vpop.permute.xlu1 %292 }
 0x185   :  { %v1028_v56 = vsel %vm515_vm4, %v1025_v35, %v1027_v47  ;;  %v1026_v0 = vsel %vm515_vm4, %v1024_v18, %v1025_v35  ;;  %v374_v33 = vmul.f32 2.0, %v1943_v25  ;;  %v377_v35 = vmul.f32 2.0, %v1957_v63  ;;  %v2355_v18 = vld [vmem:[#allocation17_spill] sm:$0xff] }
 0x186   :  { %1059 = vrot.lane.b32.xlu1 %v1028_v56, %s1395_s20  ;;  %1057 = vrot.lane.b32.xlu0 %v1026_v0, %s1395_s20  ;;  %v287_v59 = vpop.permute.xlu0 %286  ;;  %v1970_v47 = vsub.f32 %v2355_v18, %v293_v7  ;;  %v522_v19 = vrot.slane %v1943_v25, 2  ;;  %v1980_v7 = vmul.f32 %v572_v27, %v572_v27 }
 0x187   :  { %v1953_v55 = vsub.f32 %v2351_v52, %v287_v59  ;;  %v425_v34 = vrot.slane %v374_v33, 1  ;;  %v430_v37 = vrot.slane %v377_v35, 1 }
 0x188   :  { %v297_v29 = vpop.permute.xlu1 %296  ;;  %v379_v51 = vmul.f32 2.0, %v1970_v47  ;;  %v531_v12 = vrot.slane %v1970_v47, 2  ;;  %v523_v22 = vsel %vm515_vm4, %v521_v60, %v522_v19 }
 0x189   :  { %v376_v57 = vmul.f32 2.0, %v1953_v55  ;;  %v428_v40 = vsel %vm418_vm5, %v425_v34, %v427_v9  ;;  %v1975_v59 = vsub.f32 %v2356_v17, %v297_v29  ;;  %v426_v20 = vsel %vm418_vm5, %v424_v43, %v425_v34  ;;  %v2361_v43 = vld [vmem:[#allocation24_spill] sm:$0xff] }
 0x18a   :  { %v291_v31 = vpop.permute.xlu0 %290  ;;  %v478_v6 = vadd.f32 %v428_v40, %v1943_v25  ;;  %v527_v29 = vrot.slane %v1957_v63, 2  ;;  %v477_v39 = vadd.f32 %v426_v20, %v349_v36  ;;  %v526_v1 = vrot.slane %v1953_v55, 2 }
 0x18b   :  { %v1960_v10 = vsub.f32 %v2353_v38, %v291_v31  ;;  %v573_v31 = vadd.f32 %v520_v58, %v476_v16  ;;  %v429_v53 = vrot.slane %v376_v57, 1  ;;  %v381_v24 = vmul.f32 2.0, %v1975_v59  ;;  %v2360_v38 = vld [vmem:[#allocation31_spill] sm:$0xff] }
 0x18c   :  { %v301_v50 = vpop.permute.xlu1 %300  ;;  %v525_v25 = vsel %vm515_vm4, %v522_v19, %v524_v26  ;;  %v434_v54 = vrot.slane %v379_v51, 1  ;;  %v534_v36 = vrot.slane %v1975_v59, 2  ;;  %v574_v3 = vadd.f32 %v523_v22, %v477_v39  ;;  %v2363_v26 = vld [vmem:[#allocation13_spill] sm:$0xff]  ;;  %v2364_v51 = vld [vmem:[#allocation12_spill] sm:$0xff] }
 0x18d   :  { %v378_v56 = vmul.f32 2.0, %v1960_v10  ;;  %v1986_v21 = vmul.f32 %v573_v31, %v573_v31  ;;  %v1990_v30 = vsub.f32 %v2357_v14, %v301_v50  ;;  %v431_v2 = vsel %vm418_vm5, %v429_v53, %v430_v37 }
 0x18e   :  { %v295_v41 = vpop.permute.xlu0 %294  ;;  %v575_v33 = vadd.f32 %v525_v25, %v478_v6  ;;  %v437_v11 = vrot.slane %v381_v24, 1  ;;  %v529_v32 = vrot.slane %v1960_v10, 2  ;;  %v479_v44 = vadd.f32 %v431_v2, %v1953_v55 }
 0x18f   :  { %v1965_v15 = vsub.f32 %v2354_v61, %v295_v41  ;;  %v432_v41 = vrot.slane %v378_v56, 1  ;;  %v383_v46 = vmul.f32 2.0, %v1990_v30  ;;  %v528_v9 = vsel %vm515_vm4, %v526_v1, %v527_v29 }
 0x190   :  { %v305_v45 = vpop.permute.xlu1 %304  ;;  %v2013_v57 = vmul.f32 %v575_v33, %v575_v33  ;;  %v2026_v56 = vmul.f32 %v574_v3, %v574_v3  ;;  %v576_v40 = vadd.f32 %v528_v9, %v479_v44  ;;  %v2366_v3 = vld [vmem:[#allocation15_spill] sm:$0xff] }
 0x191   :  { %v380_v48 = vmul.f32 2.0, %v1965_v15  ;;  %v433_v50 = vsel %vm418_vm5, %v430_v37, %v432_v41  ;;  %v2006_v34 = vsub.f32 %v2359_v4, %v305_v45  ;;  %v2362_v45 = vld [vmem:[#allocation11_spill] sm:$0xff]  ;;  %v532_v35 = vrot.slane %v1965_v15, 2  ;;  %v2367_v4 = vld [vmem:[#allocation28_spill] sm:$0xff] }
 0x192   :  { %v1945_v8 = vpop.permute.xlu0 %298  ;;  %v480_v5 = vadd.f32 %v433_v50, %v1957_v63  ;;  %v530_v63 = vsel %vm515_vm4, %v527_v29, %v529_v32  ;;  %v440_v17 = vrot.slane %v383_v46, 1  ;;  %v2365_v29 = vld [vmem:[#allocation29_spill] sm:$0xff]  ;;  %v2046_v24 = vmul.f32 %v576_v40, %v576_v40 }
 0x193   :  { %v435_v13 = vrot.slane %v380_v48, 1  ;;  %v1999_v52 = vsub.f32 %v2358_v49, %v1945_v8  ;;  %v537_v8 = vrot.slane %v1990_v30, 2  ;;  %v385_v59 = vmul.f32 2.0, %v2006_v34 }
 0x194   :  { %v309_v28 = vpop.permute.xlu1 %308  ;;  %v577_v53 = vadd.f32 %v530_v63, %v480_v5  ;;  %v535_v39 = vsel %vm515_vm4, %v532_v35, %v534_v36  ;;  %v533_v2 = vsel %vm515_vm4, %v531_v12, %v532_v35 }
 0x195   :  { %v438_v10 = vsel %vm418_vm5, %v435_v13, %v437_v11  ;;  %v382_v55 = vmul.f32 2.0, %v1999_v52  ;;  %v2019_v61 = vsub.f32 %v2361_v43, %v309_v28  ;;  %v436_v27 = vsel %vm418_vm5, %v434_v54, %v435_v13 }
 0x196   :  { %v303_v62 = vpop.permute.xlu0 %302  ;;  %v482_v31 = vadd.f32 %v438_v10, %v1965_v15  ;;  %v536_v19 = vrot.slane %v1999_v52, 2  ;;  %v481_v20 = vadd.f32 %v436_v27, %v1970_v47  ;;  %v444_v1 = vrot.slane %v385_v59, 1 }
 0x197   :  { %v2009_v16 = vsub.f32 %v2360_v38, %v303_v62  ;;  %v439_v60 = vrot.slane %v382_v55, 1  ;;  %v387_v48 = vmul.f32 2.0, %v2019_v61  ;;  %v544_v13 = vrot.slane %v2019_v61, 2  ;;  %v2368_v55 = vld [vmem:[#allocation16_spill] sm:$0xff] }
 0x198   :  { %v313_v23 = vpop.permute.xlu1 %312  ;;  %v579_v25 = vadd.f32 %v535_v39, %v482_v31  ;;  %v2051_v33 = vmul.f32 %v577_v53, %v577_v53  ;;  %v538_v22 = vsel %vm515_vm4, %v536_v19, %v537_v8 }
 0x199   :  { %v384_v28 = vmul.f32 2.0, %v2009_v16  ;;  %v2041_v41 = vsub.f32 %v2364_v51, %v313_v23  ;;  %v578_v23 = vadd.f32 %v533_v2, %v481_v20  ;;  %v447_v54 = vrot.slane %v387_v48, 1 }
 0x19a   :  { %v307_v0 = vpop.permute.xlu0 %306  ;;  %v441_v50 = vsel %vm418_vm5, %v439_v60, %v440_v17  ;;  %v539_v11 = vrot.slane %v2009_v16, 2  ;;  %v2068_v9 = vmul.f32 %v579_v25, %v579_v25 }
 0x19b   :  { %v2022_v58 = vsub.f32 %v2362_v45, %v307_v0  ;;  %v541_v0 = vrot.slane %v2006_v34, 2  ;;  %v442_v47 = vrot.slane %v384_v28, 1  ;;  %v389_v12 = vmul.f32 2.0, %v2041_v41 }
 0x19c   :  { %v317_v18 = vpop.permute.xlu1 %316  ;;  %v547_v46 = vrot.slane %v2041_v41, 2  ;;  %v2075_v61 = vmul.f32 %v578_v23, %v578_v23  ;;  %v483_v45 = vadd.f32 %v441_v50, %v1999_v52 }
 0x19d   :  { %v386_v6 = vmul.f32 2.0, %v2022_v58  ;;  %v443_v5 = vsel %vm418_vm5, %v440_v17, %v442_v47  ;;  %v542_v10 = vrot.slane %v2022_v58, 2  ;;  %v2073_v16 = vsub.f32 %v2368_v55, %v317_v18 }
 0x19e   :  { %v311_v42 = vpop.permute.xlu0 %310  ;;  %v484_v28 = vadd.f32 %v443_v5, %v1990_v30  ;;  %v450_v31 = vrot.slane %v389_v12, 1  ;;  %v580_v19 = vadd.f32 %v538_v22, %v483_v45 }
 0x19f   :  { %v2038_v37 = vsub.f32 %v2363_v26, %v311_v42  ;;  %v445_v49 = vrot.slane %v386_v6, 1  ;;  %v551_v60 = vrot.slane %v2073_v16, 2  ;;  %v545_v48 = vsel %vm515_vm4, %v542_v10, %v544_v13 }
 0x1a0   :  { %v321_v42 = vpop.permute.xlu1 %320 }
 0x1a1   :  { %v388_v36 = vmul.f32 2.0, %v2038_v37  ;;  %v2066_v38 = vsub.f32 %v2367_v4, %v321_v42  ;;  %v448_v63 = vsel %vm418_vm5, %v445_v49, %v447_v54  ;;  %v446_v40 = vsel %vm418_vm5, %v444_v1, %v445_v49 }
 0x1a2   :  { %v315_v62 = vpop.permute.xlu0 %314  ;;  %v486_v53 = vadd.f32 %v448_v63, %v2022_v58  ;;  %v485_v20 = vadd.f32 %v446_v40, %v2006_v34  ;;  %v546_v58 = vrot.slane %v2038_v37, 2 }
 0x1a3   :  { %v2044_v15 = vsub.f32 %v2365_v29, %v315_v62  ;;  %v449_v62 = vrot.slane %v388_v36, 1  ;;  %v393_v52 = vmul.f32 2.0, %v2066_v38  ;;  %v554_v22 = vrot.slane %v2066_v38, 2 }
 0x1a4   :  { %v583_v2 = vadd.f32 %v545_v48, %v486_v53 }
 0x1a5   :  { %v390_v32 = vmul.f32 2.0, %v2044_v15  ;;  %v451_v6 = vsel %vm418_vm5, %v449_v62, %v450_v31  ;;  %v457_v39 = vrot.slane %v393_v52, 1  ;;  %v549_v1 = vrot.slane %v2044_v15, 2 }
 0x1a6   :  { %v319_v14 = vpop.permute.xlu0 %318  ;;  %v487_v34 = vadd.f32 %v451_v6, %v2038_v37  ;;  %v548_v37 = vsel %vm515_vm4, %v546_v58, %v547_v46 }
 0x1a7   :  { %v2062_v44 = vsub.f32 %v2366_v3, %v319_v14  ;;  %v452_v17 = vrot.slane %v390_v32, 1  ;;  %v550_v36 = vsel %vm515_vm4, %v547_v46, %v549_v1 }
 0x1a8   :  { %v584_v32 = vadd.f32 %v548_v37, %v487_v34 }
 0x1a9   :  { %v392_v59 = vmul.f32 2.0, %v2062_v44  ;;  %v453_v29 = vsel %vm418_vm5, %v450_v31, %v452_v17  ;;  %v552_v4 = vrot.slane %v2062_v44, 2 }
 0x1aa   :  { %v488_v23 = vadd.f32 %v453_v29, %v2041_v41 }
 0x1ab   :  { %v455_v26 = vrot.slane %v392_v59, 1 }
 0x1ad   :  { %v458_v54 = vsel %vm418_vm5, %v455_v26, %v457_v39 }
 0x1ae   :  { %v490_v38 = vadd.f32 %v458_v54, %v2062_v44 }
 0x1d8   :  { %v1030_v43 = vpop.permute.xlu0 %1029  ;;  %v1032_v27 = vpop.permute.xlu1 %1031 }
 0x1d9   :  { %v2079_v35 = vadd.f32 %v1030_v43, %v1980_v7  ;;  %v2085_v18 = vadd.f32 %v1032_v27, %v1986_v21  ;;  %v540_v7 = vsel %vm515_vm4, %v537_v8, %v539_v11  ;;  %v391_v21 = vmul.f32 2.0, %v2073_v16 }
 0x1da   :  { %v581_v30 = vadd.f32 %v540_v7, %v484_v28  ;;  %v543_v8 = vsel %vm515_vm4, %v541_v0, %v542_v10  ;;  %v933_v0 = vmul.f32 %v580_v19, %v580_v19  ;;  %v936_v11 = vmul.f32 %v583_v2, %v583_v2 }
 0x1db   :  { %1311 = vrsqrt.f32 %v2079_v35  ;;  %v582_v13 = vadd.f32 %v543_v8, %v485_v20  ;;  %v454_v42 = vrot.slane %v391_v21, 1  ;;  %vm1095_vm6 = vcmp.eq.f32.partialorder %v2079_v35, inf }
 0x1dc   :  { %1313 = vrsqrt.f32 %v2085_v18  ;;  %v934_v15 = vmul.f32 %v581_v30, %v581_v30  ;;  %vm1097_vm7 = vcmp.eq.f32.partialorder %v2079_v35, 0.0  ;;  %v1098_v44 = vand.u32 2147483648, %v2079_v35 }
 0x1dd   :  { %v456_v50 = vsel %vm418_vm5, %v454_v42, %v455_v26  ;;  %v935_v12 = vmul.f32 %v582_v13, %v582_v13  ;;  %vm1102_vm8 = vcmp.eq.f32.partialorder %v2085_v18, inf  ;;  %v1105_v27 = vand.u32 2147483648, %v2085_v18 }
 0x1de   :  { %v1036_v51 = vpop.permute.xlu1 %1035  ;;  %v1034_v14 = vpop.permute.xlu0 %1033  ;;  %vm1104_vm9 = vcmp.eq.f32.partialorder %v2085_v18, 0.0  ;;  %v555_v28 = vsel %vm515_vm4, %v552_v4, %v554_v22 }
 0x1df   :  { %v2107_v47 = vadd.f32 %v1036_v51, %v2013_v57  ;;  %v2110_v25 = vadd.f32 %v1034_v14, %v2026_v56  ;;  %v587_v19 = vadd.f32 %v555_v28, %v490_v38 }
 0x1e1   :  { %1315 = vrsqrt.f32 %v2107_v47  ;;  %vm1116_vm10 = vcmp.eq.f32.partialorder %v2107_v47, inf  ;;  %vm1118_vm11 = vcmp.eq.f32.partialorder %v2107_v47, 0.0  ;;  %v1119_v6 = vand.u32 2147483648, %v2107_v47 }
 0x1e2   :  { %1317 = vrsqrt.f32 %v2110_v25  ;;  %v1040_v57 = vpop.permute.xlu1 %1039  ;;  %v1038_v49 = vpop.permute.xlu0 %1037  ;;  %vm1109_vm12 = vcmp.eq.f32.partialorder %v2110_v25, inf  ;;  %v1112_v51 = vand.u32 2147483648, %v2110_v25  ;;  %vm1111_vm13 = vcmp.eq.f32.partialorder %v2110_v25, 0.0 }
 0x1e3   :  { %v2119_v56 = vadd.f32 %v1040_v57, %v2051_v33  ;;  %v2125_v41 = vadd.f32 %v1038_v49, %v2046_v24  ;;  %v585_v33 = vadd.f32 %v550_v36, %v488_v23  ;;  %v489_v24 = vadd.f32 %v456_v50, %v2073_v16 }
 0x1e5   :  { %v1312_v3 = vpop.eup %1311  ;;  %1319 = vrsqrt.f32 %v2119_v56  ;;  %v938_v7 = vmul.f32 %v585_v33, %v585_v33  ;;  %vm1130_vm14 = vcmp.eq.f32.partialorder %v2119_v56, inf  ;;  %vm1132_vm15 = vcmp.eq.f32.partialorder %v2119_v56, 0.0 }
 0x1e6   :  { %v1314_v5 = vpop.eup %1313  ;;  %1321 = vrsqrt.f32 %v2125_v41  ;;  %v1044_v46 = vpop.permute.xlu1 %1043  ;;  %v1094_v10 = vmul.f32 %v1312_v3, %v2079_v35  ;;  %v1133_v13 = vand.u32 2147483648, %v2119_v56  ;;  %vm1123_vm0 = vcmp.eq.f32.partialorder %v2125_v41, inf }
 0x1e7   :  { %v2135_v55 = vadd.f32 %v1044_v46, %v2068_v9  ;;  %v1042_v43 = vpop.permute.xlu0 %1041  ;;  %v1101_v45 = vmul.f32 %v1314_v5, %v2085_v18  ;;  %v1126_v42 = vand.u32 2147483648, %v2125_v41  ;;  %vm1125_vm1 = vcmp.eq.f32.partialorder %v2125_v41, 0.0 }
 0x1e8   :  { %v2141_v62 = vadd.f32 %v1042_v43, %v2075_v61  ;;  %v1096_v63 = vsel %vm1095_vm6, %v2079_v35, %v1094_v10  ;;  %v937_v61 = vmul.f32 %v584_v32, %v584_v32 }
 0x1e9   :  { %1323 = vrsqrt.f32 %v2135_v55  ;;  %v1103_v9 = vsel %vm1102_vm8, %v2085_v18, %v1101_v45  ;;  %v1099_v40 = vsel %vm1097_vm7, %v1098_v44, %v1096_v63  ;;  %v553_v18 = vsel %vm515_vm4, %v551_v60, %v552_v4 }
 0x1ea   :  { %1325 = vrsqrt.f32 %v2141_v62  ;;  %v1048_v17 = vpop.permute.xlu1 %1047  ;;  %v1106_v59 = vsel %vm1104_vm9, %v1105_v27, %v1103_v9  ;;  %1221 = vrot.lane.b32.xlu0 %v1099_v40, %s1396_s21  ;;  %v586_v48 = vadd.f32 %v553_v18, %v489_v24  ;;  %vm1144_vm2 = vcmp.eq.f32.partialorder %v2135_v55, inf }
 0x1eb   :  { %v1316_v31 = vpop.eup %1315  ;;  %v2152_v52 = vadd.f32 %v1048_v17, %v934_v15  ;;  %1223 = vrot.lane.b32.xlu1 %v1106_v59, %s1396_s21  ;;  %v1046_v35 = vpop.permute.xlu0 %1045  ;;  %v940_v15 = vmul.f32 %v587_v19, %v587_v19  ;;  %vm1146_vm3 = vcmp.eq.f32.partialorder %v2135_v55, 0.0  ;;  %vm1137_vm4 = vcmp.eq.f32.partialorder %v2141_v62, inf }
 0x1ec   :  { %v1318_v53 = vpop.eup %1317  ;;  %v2158_v20 = vadd.f32 %v1046_v35, %v933_v0  ;;  %v1115_v21 = vmul.f32 %v1316_v31, %v2107_v47  ;;  %v1140_v32 = vand.u32 2147483648, %v2141_v62  ;;  %vm1139_vm5 = vcmp.eq.f32.partialorder %v2141_v62, 0.0 }
 0x1ed   :  { %1327 = vrsqrt.f32 %v2152_v52  ;;  %v1108_v26 = vmul.f32 %v1318_v53, %v2110_v25  ;;  %v939_v46 = vmul.f32 %v586_v48, %v586_v48  ;;  %vm1158_vm6 = vcmp.eq.f32.partialorder %v2152_v52, inf }
 0x1ee   :  { %1329 = vrsqrt.f32 %v2158_v20  ;;  %v1052_v16 = vpop.permute.xlu1 %1051  ;;  %v1117_v60 = vsel %vm1116_vm10, %v2107_v47, %v1115_v21  ;;  %vm1160_vm7 = vcmp.eq.f32.partialorder %v2152_v52, 0.0  ;;  %v1161_v43 = vand.u32 2147483648, %v2152_v52 }
 0x1ef   :  { %v1320_v30 = vpop.eup %1319  ;;  %v2170_v8 = vadd.f32 %v1052_v16, %v936_v11  ;;  %v1050_v29 = vpop.permute.xlu0 %1049  ;;  %v1120_v58 = vsel %vm1118_vm11, %v1119_v6, %v1117_v60  ;;  %v1110_v39 = vsel %vm1109_vm12, %v2110_v25, %v1108_v26  ;;  %vm1151_vm8 = vcmp.eq.f32.partialorder %v2158_v20, inf }
 0x1f0   :  { %v1322_v1 = vpop.eup %1321  ;;  %v2174_v14 = vadd.f32 %v1050_v29, %v935_v12  ;;  %1227 = vrot.lane.b32.xlu1 %v1120_v58, %s1396_s21  ;;  %v1113_v2 = vsel %vm1111_vm13, %v1112_v51, %v1110_v39  ;;  %v1129_v47 = vmul.f32 %v1320_v30, %v2119_v56  ;;  %v1154_v63 = vand.u32 2147483648, %v2158_v20 }
 0x1f1   :  { %1331 = vrsqrt.f32 %v2170_v8  ;;  %1225 = vrot.lane.b32.xlu0 %v1113_v2, %s1396_s21  ;;  %v1122_v25 = vmul.f32 %v1322_v1, %v2125_v41  ;;  %vm1153_vm9 = vcmp.eq.f32.partialorder %v2158_v20, 0.0  ;;  %vm1172_vm10 = vcmp.eq.f32.partialorder %v2170_v8, inf }
 0x1f2   :  { %1333 = vrsqrt.f32 %v2174_v14  ;;  %v1131_v34 = vsel %vm1130_vm14, %v2119_v56, %v1129_v47  ;;  %v1175_v31 = vand.u32 2147483648, %v2170_v8  ;;  %vm1174_vm11 = vcmp.eq.f32.partialorder %v2170_v8, 0.0 }
 0x1f3   :  { %v1324_v0 = vpop.eup %1323  ;;  %v1054_v23 = vpop.permute.xlu0 %1053  ;;  %v1134_v22 = vsel %vm1132_vm15, %v1133_v13, %v1131_v34  ;;  %v1124_v57 = vsel %vm1123_vm0, %v2125_v41, %v1122_v25  ;;  %v1147_v41 = vand.u32 2147483648, %v2135_v55  ;;  %vm1165_vm12 = vcmp.eq.f32.partialorder %v2174_v14, inf }
 0x1f4   :  { %v1326_v54 = vpop.eup %1325  ;;  %v2190_v49 = vadd.f32 %v1054_v23, %v937_v61  ;;  %v1056_v37 = vpop.permute.xlu1 %1055  ;;  %1231 = vrot.lane.b32.xlu1 %v1134_v22, %s1396_s21  ;;  %v1127_v36 = vsel %vm1125_vm1, %v1126_v42, %v1124_v57  ;;  %v1143_v56 = vmul.f32 %v1324_v0, %v2135_v55  ;;  %vm1167_vm13 = vcmp.eq.f32.partialorder %v2174_v14, 0.0 }
 0x1f5   :  { %v2195_v50 = vadd.f32 %v1056_v37, %v938_v7  ;;  %1229 = vrot.lane.b32.xlu0 %v1127_v36, %s1396_s21  ;;  %v1136_v11 = vmul.f32 %v1326_v54, %v2141_v62  ;;  %v1168_v7 = vand.u32 2147483648, %v2174_v14 }
 0x1f6   :  { %1335 = vrsqrt.f32 %v2190_v49  ;;  %v1145_v12 = vsel %vm1144_vm2, %v2135_v55, %v1143_v56  ;;  %vm1179_vm14 = vcmp.eq.f32.partialorder %v2190_v49, inf  ;;  %v1182_v6 = vand.u32 2147483648, %v2190_v49 }
 0x1f7   :  { %v1328_v3 = vpop.eup %1327  ;;  %1337 = vrsqrt.f32 %v2195_v50  ;;  %v1148_v4 = vsel %vm1146_vm3, %v1147_v41, %v1145_v12  ;;  %v1138_v33 = vsel %vm1137_vm4, %v2141_v62, %v1136_v11  ;;  %vm1181_vm15 = vcmp.eq.f32.partialorder %v2190_v49, 0.0 }
 0x1f8   :  { %v1330_v38 = vpop.eup %1329  ;;  %1235 = vrot.lane.b32.xlu1 %v1148_v4, %s1396_s21  ;;  %v1141_v5 = vsel %vm1139_vm5, %v1140_v32, %v1138_v33  ;;  %v1157_v10 = vmul.f32 %v1328_v3, %v2152_v52  ;;  %v1060_v24 = vpop.permute.xlu1 %1059  ;;  %vm1186_vm0 = vcmp.eq.f32.partialorder %v2195_v50, inf  ;;  %v1189_v60 = vand.u32 2147483648, %v2195_v50 }
 0x1f9   :  { %1233 = vrot.lane.b32.xlu0 %v1141_v5, %s1396_s21  ;;  %v1058_v55 = vpop.permute.xlu0 %1057  ;;  %v1150_v45 = vmul.f32 %v1330_v38, %v2158_v20  ;;  %v1092_v44 = vadd.f32 %v1060_v24, %v940_v15  ;;  %vm1188_vm1 = vcmp.eq.f32.partialorder %v2195_v50, 0.0 }
 0x1fa   :  { %v1091_v62 = vadd.f32 %v1058_v55, %v939_v46  ;;  %v1159_v27 = vsel %vm1158_vm6, %v2152_v52, %v1157_v10  ;;  %vm1269_vm6 = vcmask 130048  }
 0x1fb   :  { %v1332_v9 = vpop.eup %1331  ;;  %v1162_v40 = vsel %vm1160_vm7, %v1161_v43, %v1159_v27  ;;  %v1152_v17 = vsel %vm1151_vm8, %v2158_v20, %v1150_v45  ;;  %1339 = vrsqrt.f32 %v1092_v44  ;;  %vm1200_vm2 = vcmp.eq.f32.partialorder %v1092_v44, inf }
 0x1fc   :  { %v1334_v59 = vpop.eup %1333  ;;  %1239 = vrot.lane.b32.xlu1 %v1162_v40, %s1396_s21  ;;  %v1155_v61 = vsel %vm1153_vm9, %v1154_v63, %v1152_v17  ;;  %v1171_v28 = vmul.f32 %v1332_v9, %v2170_v8  ;;  %1341 = vrsqrt.f32 %v1091_v62  ;;  %v1203_v1 = vand.u32 2147483648, %v1092_v44 }
 0x1fd   :  { %1237 = vrot.lane.b32.xlu0 %v1155_v61, %s1396_s21  ;;  %v1164_v52 = vmul.f32 %v1334_v59, %v2174_v14  ;;  %vm1202_vm3 = vcmp.eq.f32.partialorder %v1092_v44, 0.0  ;;  %vm1193_vm4 = vcmp.eq.f32.partialorder %v1091_v62, inf  ;;  %v1196_v47 = vand.u32 2147483648, %v1091_v62 }
 0x1fe   :  { %v1173_v35 = vsel %vm1172_vm10, %v2170_v8, %v1171_v28  ;;  %vm1195_vm5 = vcmp.eq.f32.partialorder %v1091_v62, 0.0 }
 0x1ff   :  { %v1176_v19 = vsel %vm1174_vm11, %v1175_v31, %v1173_v35  ;;  %v1166_v18 = vsel %vm1165_vm12, %v2174_v14, %v1164_v52 }
 0x200   :  { %v1336_v53 = vpop.eup %1335  ;;  %1243 = vrot.lane.b32.xlu1 %v1176_v19, %s1396_s21  ;;  %v1169_v20 = vsel %vm1167_vm13, %v1168_v7, %v1166_v18 }
 0x201   :  { %v1338_v21 = vpop.eup %1337  ;;  %1241 = vrot.lane.b32.xlu0 %v1169_v20, %s1396_s21  ;;  %v1178_v48 = vmul.f32 %v1336_v53, %v2190_v49 }
 0x202   :  { %v1185_v26 = vmul.f32 %v1338_v21, %v2195_v50 }
 0x203   :  { %v1180_v16 = vsel %vm1179_vm14, %v2190_v49, %v1178_v48 }
 0x204   :  { %v1183_v51 = vsel %vm1181_vm15, %v1182_v6, %v1180_v16  ;;  %v1187_v30 = vsel %vm1186_vm0, %v2195_v50, %v1185_v26 }
 0x205   :  { %1245 = vrot.lane.b32.xlu0 %v1183_v51, %s1396_s21  ;;  %v1190_v8 = vsel %vm1188_vm1, %v1189_v60, %v1187_v30  ;;  %v1340_v29 = vpop.eup %1339 }
 0x206   :  { %1247 = vrot.lane.b32.xlu1 %v1190_v8, %s1396_s21  ;;  %v1342_v58 = vpop.eup %1341  ;;  %v1199_v39 = vmul.f32 %v1340_v29, %v1092_v44 }
 0x207   :  { %v1192_v14 = vmul.f32 %v1342_v58, %v1091_v62 }
 0x208   :  { %v1201_v2 = vsel %vm1200_vm2, %v1092_v44, %v1199_v39 }
 0x209   :  { %v1204_v13 = vsel %vm1202_vm3, %v1203_v1, %v1201_v2  ;;  %v1194_v25 = vsel %vm1193_vm4, %v1091_v62, %v1192_v14 }
 0x20a   :  { %1251 = vrot.lane.b32.xlu1 %v1204_v13, %s1396_s21  ;;  %v1197_v34 = vsel %vm1195_vm5, %v1196_v47, %v1194_v25 }
 0x20b   :  { %1249 = vrot.lane.b32.xlu0 %v1197_v34, %s1396_s21 }
 0x25c   :  { %v1222_v42 = vpop.permute.xlu0 %1221 }
 0x25d   :  { %v1224_v0 = vpop.permute.xlu1 %1223  ;;  %1270 = vst.msk [vmem:[#allocation5] sm:$0xff] %vm1269_vm6, %v1222_v42 }
 0x25e   :  { %1271 = vst.msk [vmem:[#allocation5 + $0x8] sm:$0xff] %vm1269_vm6, %v1224_v0 }
 0x262   :  { %v1228_v23 = vpop.permute.xlu1 %1227 }
 0x263   :  { %1273 = vst.msk [vmem:[#allocation5 + $0x18] sm:$0xff] %vm1269_vm6, %v1228_v23  ;;  %v1226_v22 = vpop.permute.xlu0 %1225 }
 0x264   :  { %1272 = vst.msk [vmem:[#allocation5 + $0x10] sm:$0xff] %vm1269_vm6, %v1226_v22 }
 0x266   :  { %v1232_v57 = vpop.permute.xlu1 %1231 }
 0x267   :  { %1275 = vst.msk [vmem:[#allocation5 + $0x28] sm:$0xff] %vm1269_vm6, %v1232_v57  ;;  %v1230_v15 = vpop.permute.xlu0 %1229 }
 0x268   :  { %1274 = vst.msk [vmem:[#allocation5 + $0x20] sm:$0xff] %vm1269_vm6, %v1230_v15 }
 0x26a   :  { %v1236_v54 = vpop.permute.xlu1 %1235 }
 0x26b   :  { %1277 = vst.msk [vmem:[#allocation5 + $0x38] sm:$0xff] %vm1269_vm6, %v1236_v54  ;;  %v1234_v49 = vpop.permute.xlu0 %1233 }
 0x26c   :  { %1276 = vst.msk [vmem:[#allocation5 + $0x30] sm:$0xff] %vm1269_vm6, %v1234_v49 }
 0x26e   :  { %v1240_v37 = vpop.permute.xlu1 %1239 }
 0x26f   :  { %1279 = vst.msk [vmem:[#allocation5 + $0x48] sm:$0xff] %vm1269_vm6, %v1240_v37  ;;  %v1238_v36 = vpop.permute.xlu0 %1237 }
 0x270   :  { %1278 = vst.msk [vmem:[#allocation5 + $0x40] sm:$0xff] %vm1269_vm6, %v1238_v36 }
 0x272   :  { %v1244_v56 = vpop.permute.xlu1 %1243 }
 0x273   :  { %1281 = vst.msk [vmem:[#allocation5 + $0x58] sm:$0xff] %vm1269_vm6, %v1244_v56  ;;  %v1242_v50 = vpop.permute.xlu0 %1241 }
 0x274   :  { %1280 = vst.msk [vmem:[#allocation5 + $0x50] sm:$0xff] %vm1269_vm6, %v1242_v50 }
 0x277   :  { %v1246_v41 = vpop.permute.xlu0 %1245 }
 0x278   :  { %1282 = vst.msk [vmem:[#allocation5 + $0x60] sm:$0xff] %vm1269_vm6, %v1246_v41  ;;  %v1248_v11 = vpop.permute.xlu1 %1247 }
 0x279   :  { %1283 = vst.msk [vmem:[#allocation5 + $0x68] sm:$0xff] %vm1269_vm6, %v1248_v11 }
 0x27c   :  { %v1252_v12 = vpop.permute.xlu1 %1251 }
 0x27d   :  { %1285 = vst.msk [vmem:[#allocation5 + $0x78] sm:$0xff] %vm1269_vm6, %v1252_v12  ;;  %v1250_v32 = vpop.permute.xlu0 %1249 }
 0x27e   :  { %1284 = vst.msk [vmem:[#allocation5 + $0x70] sm:$0xff] %vm1269_vm6, %v1250_v32 }
 0x27f   :  { %1376 = shalt.err (!%p1373_p12)
}
 0x280   :  { %s1377_s28 = scalar_lea.hbm %s2280_s1, 2048 }
 0x281   :  { %p1378_p13 = scmp.ne.s32.totalorder %s2280_s1, %s1377_s28  ;;  %p1381_p0 = scmp.lt.u32.totalorder %s1377_s28, %s2280_s1 }
 0x283   :  { %p1383_p1 = pnand %p1381_p0, %p1378_p13 }
 0x285   :  { %1386 = shalt.err (!%p1383_p1)
}
 0x286   :  { %1297 = dma.vmem_to_hbm [thread:$0]  %s1292_s24, 2048, %s2280_s1, [#allocation4], %s1392_s16, %s1392_s16, %s1393_s17  }
 0x287   :  { %1389 = dma.done.wait [#allocation4], 2048  }
 0x288   :  { %1390 = vsyncadd [#allocation4], 4294965248 }
 0x289   :  { %1301 = vsyncpa [#allocation3], 1 }
 0x28a   :  { %1302 = vsyncpa [#allocation4], 1 }

</bundles_post_ra>
